<compile_context>
chip_gen: v7x
topology: tpu7x:2x2x1
jax: 0.10.0
libtpu: 0.0.40
codegen_flags: <defaults>
</compile_context>

<pallas_src>
import functools

import jax
import jax.numpy as jnp
from jax.experimental import pallas as pl
from jax.experimental.pallas import tpu as pltpu


def _round_up(n: int, m: int) -> int:
    return ((n + m - 1) // m) * m


def _i32(x: int):
    """Reinterpret a uint32 literal as an int32 constant."""
    x &= 0xFFFFFFFF
    return jnp.int32(x - (1 << 32) if x >= (1 << 31) else x)


def _dropout_keep_mask(shape, seed, row_start, dropout_p: float):
    """Boolean keep-mask with P(keep) = 1 - dropout_p.

    Counter-based hash of (seed, global_row, col); pure int32 jnp ops so it
    lowers on Mosaic and in interpret mode.  The keep test is done directly on
    the hashed integer bits (no uint->float convert, no 1/2^32 multiply).
    """
    r = jax.lax.broadcasted_iota(jnp.int32, shape, 0) + row_start
    c = jax.lax.broadcasted_iota(jnp.int32, shape, 1)
    h = seed * _i32(0x27D4EB2F) + r * _i32(0x9E3779B9) + c * _i32(0x85EBCA6B)
    # murmur3-style finalizer (int32 arithmetic wraps like uint32; shifts are
    # explicitly logical).
    h = h ^ jax.lax.shift_right_logical(h, 16)
    h = h * _i32(0x85EBCA6B)
    h = h ^ jax.lax.shift_right_logical(h, 13)
    h = h * _i32(0xC2B2AE35)
    h = h ^ jax.lax.shift_right_logical(h, 16)
    # h is ~uniform over int32 [-2^31, 2^31); keep iff h >= p*2^32 - 2^31.
    thr = int(round(dropout_p * (2.0 ** 32))) - (1 << 31)
    return h >= jnp.int32(thr)


def _residual_kernel(seed_ref, x_ref, w_ref, b_ref, alpha_ref, beta_ref, o_ref,
                     *, eps: float, dropout_p: float, training: bool):
    x = x_ref[...].astype(jnp.float32)                       # (TM, F)
    feat = x.shape[-1]

    # --- LayerNormalization (unbiased std, divide by std + eps) ---
    mean = jnp.mean(x, axis=-1, keepdims=True)
    diff = x - mean
    var_unbiased = jnp.sum(diff * diff, axis=-1, keepdims=True) / (feat - 1)
    std = jnp.sqrt(var_unbiased)
    # Per-row reciprocal (shape (TM,1)) + full-tile multiply instead of a
    # per-element divide: far fewer VALU divide slots.
    inv = 1.0 / (std + eps)
    normed = alpha_ref[...] * (diff * inv) + beta_ref[...]

    # --- sublayer: synthetic linear projection (MXU matmul, bf16 in / f32 acc) ---
    h = jnp.dot(normed.astype(w_ref.dtype), w_ref[...],
                preferred_element_type=jnp.float32)
    h = h + b_ref[...].astype(jnp.float32)

    # --- dropout (inverted dropout, training mode only) ---
    if training and dropout_p > 0.0:
        if dropout_p >= 1.0:
            h = jnp.zeros_like(h)
        else:
            row_start = pl.program_id(0) * x.shape[0]
            keep = _dropout_keep_mask(h.shape, seed_ref[0], row_start, dropout_p)
            h = jnp.where(keep, h * jnp.float32(1.0 / (1.0 - dropout_p)),
                          jnp.zeros_like(h))

    # --- residual add ---
    o_ref[...] = (x + h).astype(o_ref.dtype)


def residual_connection(x, w, b, alpha, beta, *, eps=1e-6, dropout_p=0.0,
                        training=False, seed=0, row_tile=256,
                        matmul_dtype=jnp.bfloat16):
    """x: (B, S, F).  Returns x + dropout(linear(layernorm(x))).

    w: (F, F) sublayer weight, b/alpha/beta: (F,) vectors.
    row_tile: rows of x processed per grid step (sweep 256-1024 on real shapes;
    clamped and padded for small inputs).  F should be a multiple of 128 for
    lane-dense stores.
    """
    B, S, F = x.shape
    rows = B * S
    x2 = x.reshape(rows, F)

    # Clamp / align the row tile and zero-pad rows so the grid covers them.
    row_tile = max(8, min(row_tile, _round_up(rows, 8)))
    row_tile = _round_up(row_tile, 8)
    rows_padded = _round_up(rows, row_tile)
    if rows_padded != rows:
        x2 = jnp.pad(x2, ((0, rows_padded - rows), (0, 0)))

    seed_arr = jnp.array([seed], dtype=jnp.int32)
    w_k = w.astype(matmul_dtype)                 # bf16 halves W DMA / MXU cost
    b_k = b.reshape(1, F).astype(jnp.float32)
    alpha_k = alpha.reshape(1, F).astype(jnp.float32)
    beta_k = beta.reshape(1, F).astype(jnp.float32)

    kernel = functools.partial(_residual_kernel, eps=eps,
                               dropout_p=dropout_p, training=training)

    # TODO(synk): for large F (>= 2048) tile the weight along K with an f32
    # accumulator (reduction grid axis + pl.when init/finalize) so W never
    # needs a full (F, F) VMEM block (important on v7x's 64 MiB VMEM).
    out2 = pl.pallas_call(
        kernel,
        out_shape=jax.ShapeDtypeStruct((rows_padded, F), x.dtype),
        grid_spec=pltpu.PrefetchScalarGridSpec(
            num_scalar_prefetch=1,                       # seed -> SMEM
            grid=(rows_padded // row_tile,),
            in_specs=[
                pl.BlockSpec((row_tile, F), lambda i, s: (i, 0)),   # x rows
                pl.BlockSpec((F, F), lambda i, s: (0, 0)),          # W (resident)
                pl.BlockSpec((1, F), lambda i, s: (0, 0)),          # b
                pl.BlockSpec((1, F), lambda i, s: (0, 0)),          # alpha
                pl.BlockSpec((1, F), lambda i, s: (0, 0)),          # beta
            ],
            out_specs=pl.BlockSpec((row_tile, F), lambda i, s: (i, 0)),
        ),
        compiler_params=pltpu.CompilerParams(
            # Grid steps are fully independent -> let Mosaic shard the row
            # grid across TensorCores (v7x megacore); harmless on v5e/v6e.
            dimension_semantics=("parallel",),
            # Headroom for large row tiles (double-buffered x in/out + W);
            # still below v7x's 64 MiB physical VMEM.
            vmem_limit_bytes=64 * 1024 * 1024,
        ),
    )(seed_arr, x2, w_k, b_k, alpha_k, beta_k)

    return out2[:rows].reshape(B, S, F)


def _reference(x, w, b, alpha, beta, eps=1e-6, matmul_dtype=jnp.bfloat16):
    """Pure-JAX reference (eval mode: dropout = identity), mirroring the
    kernel's bf16 matmul operands with f32 accumulation."""
    mean = x.mean(axis=-1, keepdims=True)
    diff = x - mean
    std = jnp.sqrt((diff * diff).sum(axis=-1, keepdims=True) / (x.shape[-1] - 1))
    inv = 1.0 / (std + eps)
    normed = alpha[None, None, :] * (diff * inv) + beta[None, None, :]
    h = jnp.dot(normed.astype(matmul_dtype), w.astype(matmul_dtype),
                preferred_element_type=jnp.float32)
    return x + h + b[None, None, :]


if __name__ == "__main__":
    # Small demo shapes; F is a multiple of 128 so output stores are lane-dense.
    B, S, F = 2, 8, 128
    key = jax.random.PRNGKey(0)
    kx, kw, kb = jax.random.split(key, 3)

    x = jax.random.normal(kx, (B, S, F), dtype=jnp.float32)
    # Deterministic synthetic sublayer (linear F->F) and LayerNorm params.
    w = jax.random.normal(kw, (F, F), dtype=jnp.float32) * 0.1
    b = jax.random.normal(kb, (F,), dtype=jnp.float32) * 0.1
    alpha = jnp.ones((F,), dtype=jnp.float32)    # LayerNormalization.alpha init
    beta = jnp.zeros((F,), dtype=jnp.float32)    # LayerNormalization.bias init

    # Eval mode (dropout = identity): check semantics vs pure-JAX reference.
    out_eval = residual_connection(x, w, b, alpha, beta,
                                   eps=1e-6, dropout_p=0.1, training=False,
                                   row_tile=256)
    out_eval = jax.block_until_ready(out_eval)
    ref = _reference(x, w, b, alpha, beta, eps=1e-6)
    assert out_eval.shape == (B, S, F)
    assert jnp.allclose(out_eval, ref, atol=2e-2, rtol=2e-2), "mismatch vs reference"

    # Training mode (dropout active via in-kernel hash RNG).
    out_train = residual_connection(x, w, b, alpha, beta,
                                    eps=1e-6, dropout_p=0.1, training=True,
                                    seed=1234, row_tile=256)
    out_train = jax.block_until_ready(out_train)
    assert out_train.shape == (B, S, F)
    assert bool(jnp.all(jnp.isfinite(out_train)))
    assert not jnp.allclose(out_train, out_eval)   # dropout actually did something

    print("KERNEL_OK")
</pallas_src>

<mosaic_0001>
module attributes {stable_mosaic.version = 11 : i64} {
  func.func @_residual_kernel(%arg0: i32, %arg1: memref<1xi32, #tpu.memory_space<smem>>, %arg2: memref<16x128xf32, #tpu.memory_space<vmem>>, %arg3: memref<128x128xbf16, #tpu.memory_space<vmem>>, %arg4: memref<1x128xf32, #tpu.memory_space<vmem>>, %arg5: memref<1x128xf32, #tpu.memory_space<vmem>>, %arg6: memref<1x128xf32, #tpu.memory_space<vmem>>, %arg7: memref<16x128xf32, #tpu.memory_space<vmem>>) attributes {dimension_semantics = [#tpu.dimension_semantics<parallel>], iteration_bounds = array<i64: 1>, scalar_prefetch = 1 : i64, scratch_operands = 0 : i64, tpu.core_type = #tpu.core_type<tc>, window_params = [{transform_indices = @transform_0, window_bounds = array<i64: 16, 128>}, {pipeline_mode = #tpu.pipeline_mode<synchronous>, transform_indices = @transform_1, window_bounds = array<i64: 128, 128>}, {pipeline_mode = #tpu.pipeline_mode<synchronous>, transform_indices = @transform_2, window_bounds = array<i64: 1, 128>}, {pipeline_mode = #tpu.pipeline_mode<synchronous>, transform_indices = @transform_3, window_bounds = array<i64: 1, 128>}, {pipeline_mode = #tpu.pipeline_mode<synchronous>, transform_indices = @transform_4, window_bounds = array<i64: 1, 128>}, {transform_indices = @transform_5, window_bounds = array<i64: 16, 128>}]} {
    %c0 = arith.constant 0 : index
    %c0_0 = arith.constant 0 : index
    %0 = vector.load %arg2[%c0, %c0_0] : memref<16x128xf32, #tpu.memory_space<vmem>>, vector<16x128xf32>
    %cst = arith.constant dense<0.000000e+00> : vector<16xf32>
    %1 = vector.multi_reduction <add>, %0, %cst [1] : vector<16x128xf32> to vector<16xf32>
    %2 = vector.shape_cast %1 : vector<16xf32> to vector<16x1xf32>
    %cst_1 = arith.constant 1.280000e+02 : f32
    %3 = vector.broadcast %cst_1 : f32 to vector<16x1xf32>
    %4 = arith.divf %2, %3 : vector<16x1xf32>
    %5 = vector.broadcast %4 : vector<16x1xf32> to vector<16x128xf32>
    %6 = arith.subf %0, %5 : vector<16x128xf32>
    %7 = arith.mulf %6, %6 : vector<16x128xf32>
    %cst_2 = arith.constant dense<0.000000e+00> : vector<16xf32>
    %8 = vector.multi_reduction <add>, %7, %cst_2 [1] : vector<16x128xf32> to vector<16xf32>
    %9 = vector.shape_cast %8 : vector<16xf32> to vector<16x1xf32>
    %cst_3 = arith.constant 1.270000e+02 : f32
    %10 = vector.broadcast %cst_3 : f32 to vector<16x1xf32>
    %11 = arith.divf %9, %10 : vector<16x1xf32>
    %12 = math.sqrt %11 : vector<16x1xf32>
    %cst_4 = arith.constant 9.99999997E-7 : f32
    %13 = vector.broadcast %cst_4 : f32 to vector<16x1xf32>
    %14 = arith.addf %12, %13 : vector<16x1xf32>
    %cst_5 = arith.constant 1.000000e+00 : f32
    %15 = vector.broadcast %cst_5 : f32 to vector<16x1xf32>
    %16 = arith.divf %15, %14 : vector<16x1xf32>
    %c0_6 = arith.constant 0 : index
    %c0_7 = arith.constant 0 : index
    %17 = vector.load %arg5[%c0_6, %c0_7] : memref<1x128xf32, #tpu.memory_space<vmem>>, vector<1x128xf32>
    %18 = vector.broadcast %16 : vector<16x1xf32> to vector<16x128xf32>
    %19 = arith.mulf %6, %18 : vector<16x128xf32>
    %20 = vector.broadcast %17 : vector<1x128xf32> to vector<16x128xf32>
    %21 = arith.mulf %20, %19 : vector<16x128xf32>
    %c0_8 = arith.constant 0 : index
    %c0_9 = arith.constant 0 : index
    %22 = vector.load %arg6[%c0_8, %c0_9] : memref<1x128xf32, #tpu.memory_space<vmem>>, vector<1x128xf32>
    %23 = vector.broadcast %22 : vector<1x128xf32> to vector<16x128xf32>
    %24 = arith.addf %21, %23 : vector<16x128xf32>
    %25 = arith.truncf %24 : vector<16x128xf32> to vector<16x128xbf16>
    %c0_10 = arith.constant 0 : index
    %c0_11 = arith.constant 0 : index
    %26 = vector.load %arg3[%c0_10, %c0_11] : memref<128x128xbf16, #tpu.memory_space<vmem>>, vector<128x128xbf16>
    %cst_12 = arith.constant dense<0.000000e+00> : vector<16x128xf32>
    %27 = tpu.matmul %25, %26, %cst_12 {dimension_numbers = #tpu.dot_dimension_numbers<[1], [0], [0], [1], [0, 0, 1, 1], [], []>} : vector<16x128xbf16>, vector<128x128xbf16>, vector<16x128xf32> -> vector<16x128xf32>
    %c0_13 = arith.constant 0 : index
    %c0_14 = arith.constant 0 : index
    %28 = vector.load %arg4[%c0_13, %c0_14] : memref<1x128xf32, #tpu.memory_space<vmem>>, vector<1x128xf32>
    %29 = vector.broadcast %28 : vector<1x128xf32> to vector<16x128xf32>
    %30 = arith.addf %27, %29 : vector<16x128xf32>
    %31 = arith.addf %0, %30 : vector<16x128xf32>
    %c0_15 = arith.constant 0 : index
    %c0_16 = arith.constant 0 : index
    %32 = vector.load %arg7[%c0_15, %c0_16] : memref<16x128xf32, #tpu.memory_space<vmem>>, vector<16x128xf32>
    tpu.vector_store %arg7[%c0_15, %c0_16], %31 {strides = array<i32>} : memref<16x128xf32, #tpu.memory_space<vmem>>, vector<16x128xf32>,
    return
  }
  func.func @transform_0(%arg0: i32, %arg1: memref<1xi32, #tpu.memory_space<smem>>) -> (i32, i32) {
    %c0_i32 = arith.constant 0 : i32
    %c0_i32_0 = arith.constant 0 : i32
    return %arg0, %c0_i32 : i32, i32
  }
  func.func @transform_1(%arg0: i32, %arg1: memref<1xi32, #tpu.memory_space<smem>>) -> (i32, i32) {
    %c0_i32 = arith.constant 0 : i32
    %c0_i32_0 = arith.constant 0 : i32
    %c0_i32_1 = arith.constant 0 : i32
    return %c0_i32, %c0_i32_0 : i32, i32
  }
  func.func @transform_2(%arg0: i32, %arg1: memref<1xi32, #tpu.memory_space<smem>>) -> (i32, i32) {
    %c0_i32 = arith.constant 0 : i32
    %c0_i32_0 = arith.constant 0 : i32
    %c0_i32_1 = arith.constant 0 : i32
    return %c0_i32, %c0_i32_0 : i32, i32
  }
  func.func @transform_3(%arg0: i32, %arg1: memref<1xi32, #tpu.memory_space<smem>>) -> (i32, i32) {
    %c0_i32 = arith.constant 0 : i32
    %c0_i32_0 = arith.constant 0 : i32
    %c0_i32_1 = arith.constant 0 : i32
    return %c0_i32, %c0_i32_0 : i32, i32
  }
  func.func @transform_4(%arg0: i32, %arg1: memref<1xi32, #tpu.memory_space<smem>>) -> (i32, i32) {
    %c0_i32 = arith.constant 0 : i32
    %c0_i32_0 = arith.constant 0 : i32
    %c0_i32_1 = arith.constant 0 : i32
    return %c0_i32, %c0_i32_0 : i32, i32
  }
  func.func @transform_5(%arg0: i32, %arg1: memref<1xi32, #tpu.memory_space<smem>>) -> (i32, i32) {
    %c0_i32 = arith.constant 0 : i32
    %c0_i32_0 = arith.constant 0 : i32
    return %arg0, %c0_i32 : i32, i32
  }
}

</mosaic_0001>

<bundles_post_ra>
// kernel: tpu_custom_call.1
= control target key start
LH: loop header
LB: loop body
LE: loop exit
PB: predicated region body
PF: predicated region fallthrough
CT: control target
= control target key end

     0   :  { %12 = vsyncpa [#allocation5], 0  ;;  %s625_s0 = inlined_call_operand.<no memory space> [shape: s32[1], index: 0, kind: input, shape index: {}]   ;;  %s626_s1 = inlined_call_operand.hbm [shape: f32[16,128], index: 1, kind: input, shape index: {}]   ;;  %s627_s2 = inlined_call_operand.hbm [shape: bf16[128,128], index: 2, kind: input, shape index: {}]   ;;  %s628_s3 = inlined_call_operand.hbm [shape: f32[1,128], index: 3, kind: input, shape index: {}]   ;;  %s629_s4 = inlined_call_operand.hbm [shape: f32[1,128], index: 4, kind: input, shape index: {}]   ;;  %s630_s5 = inlined_call_operand.hbm [shape: f32[1,128], index: 5, kind: input, shape index: {}]   ;;  %s631_s6 = inlined_call_operand.hbm [shape: f32[16,128], index: 6, kind: output, shape index: {}]  }
   0x1   :  { %13 = vsyncpa [#allocation8], 0 }
   0x2   :  { %14 = vsyncpa [#allocation11], 0 }
   0x3   :  { %15 = vsyncpa [#allocation6], 0  ;;  %s490_s0 = smov [#allocation7]   ;;  %s350_s24 = scalar_lea.hbm %s627_s2, 1024 }
   0x4   :  { %s33_s21 = sshll.u32 %s490_s0, 4  ;;  %p351_p0 = scmp.ne.s32.totalorder %s627_s2, %s350_s24  ;;  %s34_s21 = int_to_ptr.vmem [resolvable:$true] %s33_s21 }
   0x5   :  { %p354_p1 = scmp.lt.u32.totalorder %s350_s24, %s627_s2 }
   0x7   :  { %p356_p2 = pnand %p354_p1, %p351_p0 }
   0x9   :  { %359 = shalt.err (!%p356_p2)
}
   0xa   :  { %s360_s29 = scalar_lea.vmem %s34_s21, 1024  ;;  %p365_p4 = scmp.lt.s32.totalorder %s34_s21, %s34_s21 }
   0xb   :  { %p361_p3 = scmp.ne.s32.totalorder %s34_s21, %s360_s29  ;;  %p366_p5 = scmp.lt.s32.totalorder %s360_s29, %s360_s29 }
   0xd   :  { %p367_p6 = por %p366_p5, %p365_p4 }
   0xf   :  { %p368_p7 = pnand %p367_p6, %p361_p3 }
  0x11   :  { %371 = shalt.err (!%p368_p7)
}
  0x12   :  { %s491_s30 = smov 64   ;;  %s492_s7 = smov 4  }
  0x13   :  { %39 = dma.hbm_to_vmem [thread:$0]  %s627_s2, 1024, %s34_s21, [#allocation8], %s491_s30, %s491_s30, %s492_s7  }
  0x14   :  { %s493_s10 = smov [#allocation10]   ;;  %s494_s12 = smov [#allocation4]  }
  0x15   :  { %s56_s11 = sshll.u32 %s493_s10, 4  ;;  %s21_s13 = sshll.u32 %s494_s12, 4  ;;  %s57_s11 = int_to_ptr.vmem [resolvable:$true] %s56_s11  ;;  %s22_s13 = int_to_ptr.vmem [resolvable:$true] %s21_s13 }
  0x16   :  { %s372_s16 = scalar_lea.hbm %s629_s4, 16 }
  0x17   :  { %p373_p8 = scmp.ne.s32.totalorder %s629_s4, %s372_s16  ;;  %p376_p9 = scmp.lt.u32.totalorder %s372_s16, %s629_s4 }
  0x19   :  { %p378_p10 = pnand %p376_p9, %p373_p8 }
  0x1b   :  { %381 = shalt.err (!%p378_p10)
}
  0x1c   :  { %s382_s2 = scalar_lea.vmem %s57_s11, 16  ;;  %s386_s0 = scalar_lea.vmem %s57_s11, 32 }
  0x1d   :  { %p383_p11 = scmp.ne.s32.totalorder %s57_s11, %s382_s2  ;;  %p387_p12 = scmp.lt.s32.totalorder %s57_s11, %s57_s11 }
  0x1e   :  { %p388_p13 = scmp.lt.s32.totalorder %s386_s0, %s382_s2 }
  0x20   :  { %p389_p0 = por %p388_p13, %p387_p12 }
  0x22   :  { %p390_p1 = pnand %p389_p0, %p383_p11 }
  0x24   :  { %393 = shalt.err (!%p390_p1)
}
  0x25   :  { %59 = dma.hbm_to_vmem [thread:$0]  %s629_s4, 16, %s57_s11, [#allocation11]  }
  0x26   :  { %s394_s25 = scalar_lea.hbm %s626_s1, 256 }
  0x27   :  { %p395_p2 = scmp.ne.s32.totalorder %s626_s1, %s394_s25  ;;  %p398_p3 = scmp.lt.u32.totalorder %s394_s25, %s626_s1 }
  0x29   :  { %p400_p4 = pnand %p398_p3, %p395_p2 }
  0x2b   :  { %403 = shalt.err (!%p400_p4)
}
  0x2c   :  { %s404_s30 = scalar_lea.vmem %s22_s13, 256  ;;  %p409_p6 = scmp.lt.s32.totalorder %s22_s13, %s22_s13 }
  0x2d   :  { %p405_p5 = scmp.ne.s32.totalorder %s22_s13, %s404_s30  ;;  %p410_p7 = scmp.lt.s32.totalorder %s404_s30, %s404_s30 }
  0x2f   :  { %p411_p8 = por %p410_p7, %p409_p6 }
  0x31   :  { %p412_p9 = pnand %p411_p8, %p405_p5 }
  0x33   :  { %415 = shalt.err (!%p412_p9)
}
  0x34   :  { %s495_s4 = smov 128   ;;  %s496_s7 = smov 8  }
  0x35   :  { %27 = dma.hbm_to_vmem [thread:$0]  %s626_s1, 256, %s22_s13, [#allocation5], %s495_s4, %s495_s4, %s496_s7  }
  0x36   :  { %s497_s10 = smov [#allocation9]   ;;  %s498_s12 = smov [#allocation12]  }
  0x37   :  { %s46_s11 = sshll.u32 %s497_s10, 4  ;;  %s66_s14 = sshll.u32 %s498_s12, 4  ;;  %s47_s11 = int_to_ptr.vmem [resolvable:$true] %s46_s11  ;;  %s67_s14 = int_to_ptr.vmem [resolvable:$true] %s66_s14 }
  0x38   :  { %s416_s17 = scalar_lea.hbm %s628_s3, 16 }
  0x39   :  { %p417_p10 = scmp.ne.s32.totalorder %s628_s3, %s416_s17  ;;  %p420_p11 = scmp.lt.u32.totalorder %s416_s17, %s628_s3 }
  0x3b   :  { %p422_p12 = pnand %p420_p11, %p417_p10 }
  0x3d   :  { %425 = shalt.err (!%p422_p12)
}
  0x3e   :  { %s426_s1 = scalar_lea.vmem %s47_s11, 16  ;;  %s430_s13 = scalar_lea.vmem %s47_s11, 32 }
  0x3f   :  { %p427_p13 = scmp.ne.s32.totalorder %s47_s11, %s426_s1  ;;  %p431_p0 = scmp.lt.s32.totalorder %s47_s11, %s47_s11 }
  0x40   :  { %p432_p1 = scmp.lt.s32.totalorder %s430_s13, %s426_s1 }
  0x42   :  { %p433_p2 = por %p432_p1, %p431_p0 }
  0x44   :  { %p434_p3 = pnand %p433_p2, %p427_p13 }
  0x46   :  { %437 = shalt.err (!%p434_p3)
}
  0x47   :  { %49 = dma.hbm_to_vmem [thread:$0]  %s628_s3, 16, %s47_s11, [#allocation8]  }
  0x48   :  { %s438_s24 = scalar_lea.hbm %s630_s5, 16 }
  0x49   :  { %p439_p4 = scmp.ne.s32.totalorder %s630_s5, %s438_s24  ;;  %p442_p5 = scmp.lt.u32.totalorder %s438_s24, %s630_s5 }
  0x4b   :  { %p444_p6 = pnand %p442_p5, %p439_p4 }
  0x4d   :  { %447 = shalt.err (!%p444_p6)
}
  0x4e   :  { %s448_s29 = scalar_lea.vmem %s67_s14, 16  ;;  %s452_s30 = scalar_lea.vmem %s67_s14, 32 }
  0x4f   :  { %p449_p7 = scmp.ne.s32.totalorder %s67_s14, %s448_s29  ;;  %p453_p8 = scmp.lt.s32.totalorder %s67_s14, %s67_s14 }
  0x50   :  { %p454_p9 = scmp.lt.s32.totalorder %s452_s30, %s448_s29 }
  0x52   :  { %p455_p10 = por %p454_p9, %p453_p8 }
  0x54   :  { %p456_p11 = pnand %p455_p10, %p449_p7 }
  0x56   :  { %459 = shalt.err (!%p456_p11)
}
  0x57   :  { %69 = dma.hbm_to_vmem [thread:$0]  %s630_s5, 16, %s67_s14, [#allocation11]  }
  0x58   :  { %482 = dma.done.wait [#allocation5], 256  }
  0x59   :  { %483 = vsyncadd [#allocation5], 4294967040 }
  0x5a   :  { %484 = dma.done.wait [#allocation8], 1040  }
  0x5b   :  { %485 = vsyncadd [#allocation8], 4294966256 }
  0x5c   :  { %486 = dma.done.wait [#allocation11], 32  }
  0x5d   :  { %487 = vsyncadd [#allocation11], 4294967264  ;;  %v600_v0 = vld [vmem:[#allocation4] sm:$0xff]  ;;  %v602_v1 = vld [vmem:[#allocation4 + $0x8] sm:$0xff]  ;;  %v499_v11 = vmov 0.0   ;;  %vm500_vm0 = vmmov 0  }
  0x5e   :  { %88 = vadd.xlane.f32.xlu0 %v600_v0  ;;  %v334_v10 = vld [vmem:[#allocation7] sm:$0xff]   ;;  %302 = vmatprep.subr.bf16.mxu0 %v499_v11  ;;  %v335_v12 = vld [vmem:[#allocation7 + $0x8] sm:$0xff]   ;;  %v336_v13 = vld [vmem:[#allocation7 + $0x10] sm:$0xff]   ;;  %s501_s5 = smov [#allocation13]  }
  0x5f   :  { %303 = vmatpush3.bf16.msra.mxu0 %v334_v10  ;;  %v337_v14 = vld [vmem:[#allocation7 + $0x18] sm:$0xff]   ;;  %v338_v15 = vld [vmem:[#allocation7 + $0x20] sm:$0xff]   ;;  %318 = vmatprep.mubr.msk.bf16.mxu0 %vm500_vm0, %v499_v11  ;;  %v339_v16 = vld [vmem:[#allocation7 + $0x28] sm:$0xff]   ;;  %s268_s9 = sshll.u32 %s501_s5, 4  ;;  %s269_s9 = int_to_ptr.vmem [resolvable:$true] %s268_s9 }
  0x60   :  { %304 = vmatprep.subr.bf16.mxu0 %v499_v11  ;;  %v340_v17 = vld [vmem:[#allocation7 + $0x30] sm:$0xff]   ;;  %v341_v18 = vld [vmem:[#allocation7 + $0x38] sm:$0xff]   ;;  %v282_v37 = vld [vmem:[#allocation10] ss:$0 sm:$0xff]  ;;  %s460_s10 = scalar_lea.vmem %s269_s9, 256  ;;  %p465_p13 = scmp.lt.s32.totalorder %s269_s9, %s269_s9 }
  0x61   :  { %v283_v41 = vld [vmem:[#allocation12] ss:$0 sm:$0xff]  ;;  %v284_v46 = vld [vmem:[#allocation9] ss:$0 sm:$0xff]  ;;  %p461_p12 = scmp.ne.s32.totalorder %s269_s9, %s460_s10  ;;  %p466_p0 = scmp.lt.s32.totalorder %s460_s10, %s460_s10 }
  0x62   :  { %90 = vadd.xlane.f32.xlu0 %v602_v1 }
  0x63   :  { %305 = vmatpush3.bf16.msra.mxu0 %v335_v12  ;;  %p467_p1 = por %p466_p0, %p465_p13 }
  0x64   :  { %306 = vmatprep.subr.bf16.mxu0 %v499_v11 }
  0x65   :  { %p468_p2 = pnand %p467_p1, %p461_p12 }
  0x67   :  { %307 = vmatpush3.bf16.msra.mxu0 %v336_v13 }
  0x68   :  { %308 = vmatprep.subr.bf16.mxu0 %v499_v11 }
  0x6b   :  { %309 = vmatpush3.bf16.msra.mxu0 %v337_v14 }
  0x6c   :  { %310 = vmatprep.subr.bf16.mxu0 %v499_v11 }
  0x6f   :  { %311 = vmatpush3.bf16.msra.mxu0 %v338_v15 }
  0x70   :  { %312 = vmatprep.subr.bf16.mxu0 %v499_v11 }
  0x73   :  { %313 = vmatpush3.bf16.msra.mxu0 %v339_v16 }
  0x74   :  { %314 = vmatprep.subr.bf16.mxu0 %v499_v11 }
  0x77   :  { %315 = vmatpush3.bf16.msra.mxu0 %v340_v17 }
  0x78   :  { %316 = vmatprep.subr.bf16.mxu0 %v499_v11 }
  0x7b   :  { %317 = vmatpush3.bf16.msra.mxu0 %v341_v18 }
  0xeb   :  { %v89_v2 = vpop.xlane.xlu0 %88 }
  0xec   :  { %v93_v3 = vmul.f32 0.0078125, %v89_v2 }
  0xee   :  { %v95_v4 = vsub.f32 %v600_v0, %v93_v3 }
  0xef   :  { %v91_v5 = vpop.xlane.xlu0 %90 }
  0xf0   :  { %v94_v6 = vmul.f32 0.0078125, %v91_v5  ;;  %v97_v7 = vmul.f32 %v95_v4, %v95_v4 }
  0xf2   :  { %v96_v8 = vsub.f32 %v602_v1, %v94_v6  ;;  %99 = vadd.xlane.f32.xlu1 %v97_v7 }
  0xf4   :  { %v98_v9 = vmul.f32 %v96_v8, %v96_v8 }
  0xf6   :  { %101 = vadd.xlane.f32.xlu1 %v98_v9 }
 0x17f   :  { %v100_v19 = vpop.xlane.xlu1 %99 }
 0x180   :  { %v104_v20 = vmul.f32 0.007874016, %v100_v19 }
 0x182   :  { %342 = vrsqrt.f32 %v104_v20  ;;  %vm108_vm1 = vcmp.eq.f32.partialorder %v104_v20, inf  ;;  %v111_v25 = vand.u32 2147483648, %v104_v20  ;;  %vm110_vm2 = vcmp.eq.f32.partialorder %v104_v20, 0.0 }
 0x183   :  { %v102_v21 = vpop.xlane.xlu1 %101 }
 0x184   :  { %v105_v22 = vmul.f32 0.007874016, %v102_v21 }
 0x186   :  { %344 = vrsqrt.f32 %v105_v22  ;;  %vm115_vm3 = vcmp.eq.f32.partialorder %v105_v22, inf  ;;  %v118_v31 = vand.u32 2147483648, %v105_v22  ;;  %vm117_vm4 = vcmp.eq.f32.partialorder %v105_v22, 0.0 }
 0x18c   :  { %v343_v23 = vpop.eup %342 }
 0x18d   :  { %v107_v24 = vmul.f32 %v343_v23, %v104_v20 }
 0x18f   :  { %v109_v26 = vsel %vm108_vm1, %v104_v20, %v107_v24 }
 0x190   :  { %v345_v27 = vpop.eup %344  ;;  %v112_v28 = vsel %vm110_vm2, %v111_v25, %v109_v26 }
 0x191   :  { %v120_v29 = vadd.f32 1e-06, %v112_v28  ;;  %v114_v30 = vmul.f32 %v345_v27, %v105_v22 }
 0x193   :  { %v116_v32 = vsel %vm115_vm3, %v105_v22, %v114_v30  ;;  %346 = vrcp.f32 %v120_v29 }
 0x194   :  { %v119_v33 = vsel %vm117_vm4, %v118_v31, %v116_v32 }
 0x195   :  { %v121_v34 = vadd.f32 1e-06, %v119_v33 }
 0x197   :  { %348 = vrcp.f32 %v121_v34 }
 0x19d   :  { %v347_v35 = vpop.eup %346 }
 0x19e   :  { %v127_v36 = vmul.f32 %v347_v35, %v95_v4 }
 0x1a0   :  { %v135_v40 = vmul.f32 %v282_v37, %v127_v36 }
 0x1a1   :  { %v349_v38 = vpop.eup %348 }
 0x1a2   :  { %v128_v39 = vmul.f32 %v349_v38, %v96_v8  ;;  %v144_v43 = vadd.f32 %v283_v41, %v135_v40 }
 0x1a4   :  { %v136_v42 = vmul.f32 %v282_v37, %v128_v39 }
 0x1a6   :  { %v145_v44 = vadd.f32 %v283_v41, %v136_v42 }
 0x1a8   :  { %v146_v45 = vpack.c.bf16 %v145_v44, %v144_v43 }
 0x1aa   :  { %319 = vmatmul.mubr.bf16.vlgmr.msra.gmra.mrb[0].mxu0 %v146_v45 }
 0x27d   :  { %v252_v47 = vpop.f32.mrb[0].mxu0 }
 0x27e   :  { %v253_v48 = vadd.f32 %v284_v46, %v252_v47  ;;  %v320_v49 = vpop.f32.mrb[1].mxu0 }
 0x27f   :  { %v255_v50 = vpop.f32.mrb[2].mxu0 }
 0x280   :  { %v259_v51 = vadd.f32 %v253_v48, %v600_v0  ;;  %v256_v52 = vadd.f32 %v284_v46, %v255_v50  ;;  %v321_v53 = vpop.f32.mrb[3].mxu0 }
 0x282   :  { %261 = vst [vmem:[#allocation13] sm:$0xff] %v259_v51  ;;  %v260_v54 = vadd.f32 %v256_v52, %v602_v1 }
 0x284   :  { %262 = vst [vmem:[#allocation13 + $0x8] sm:$0xff] %v260_v54 }
 0x285   :  { %471 = shalt.err (!%p468_p2)
}
 0x286   :  { %s472_s14 = scalar_lea.hbm %s631_s6, 256 }
 0x287   :  { %p473_p3 = scmp.ne.s32.totalorder %s631_s6, %s472_s14  ;;  %p476_p4 = scmp.lt.u32.totalorder %s472_s14, %s631_s6 }
 0x289   :  { %p478_p5 = pnand %p476_p4, %p473_p3 }
 0x28b   :  { %481 = shalt.err (!%p478_p5)
}
 0x28c   :  { %274 = dma.vmem_to_hbm [thread:$0]  %s269_s9, 256, %s631_s6, [#allocation6], %s495_s4, %s495_s4, %s496_s7  }
 0x28d   :  { %488 = dma.done.wait [#allocation6], 256  }
 0x28e   :  { %489 = vsyncadd [#allocation6], 4294967040 }
 0x28f   :  { %278 = vsyncpa [#allocation5], 1 }
 0x290   :  { %279 = vsyncpa [#allocation8], 1 }
 0x291   :  { %280 = vsyncpa [#allocation11], 1 }
 0x292   :  { %281 = vsyncpa [#allocation6], 1 }

</bundles_post_ra>
